<compile_context>
chip_gen: v5e
topology: v5e:2x2
jax: 0.10.0
libtpu: 0.0.40
codegen_flags: <defaults>
</compile_context>

<pallas_src>
import math
import functools

import jax
import jax.numpy as jnp
from jax.experimental import pallas as pl
from jax.experimental.pallas import tpu as pltpu


def _scl_kernel(x_ref, c_ref, lab_ref, real_ref, fake_ref, cnt_ref, *,
                batch_size, tile_b, blocks_per_par, needs_mask):
    """Accumulates per-tile partial sums of clamp(eud*lab), clamp(eud*(1-lab))
    and lab directly into the (resident) per-core output blocks."""
    j = pl.program_id(1)                       # reduction axis over batch tiles

    @pl.when(j == 0)
    def _init():
        real_ref[...] = jnp.zeros_like(real_ref)
        fake_ref[...] = jnp.zeros_like(fake_ref)
        cnt_ref[...] = jnp.zeros_like(cnt_ref)

    x = x_ref[...].astype(jnp.float32)         # (tile_b, D)
    c = c_ref[...].astype(jnp.float32)         # (1, D) -> broadcast over rows
    lab = lab_ref[...].astype(jnp.float32)     # (tile_b, 1)

    if needs_mask:
        # Rows of a partial last tile (or of a duplicated tile when the tile
        # count does not split evenly across the parallel axis) must neither
        # pick up the 1e-12 clamp floor nor contribute to real_count.
        p = pl.program_id(0)
        row = ((p * blocks_per_par + j) * tile_b
               + jax.lax.broadcasted_iota(jnp.int32, (tile_b, 1), 0))
        valid = row < batch_size
        lab = jnp.where(valid, lab, 0.0)

    diff = x - c
    eud = jnp.sqrt(jnp.sum(diff * diff, axis=-1, keepdims=True))   # (tile_b, 1)

    # clamp is applied element-wise BEFORE the sum (matches torch .clamp().sum():
    # every fake row contributes 1e-12 to dist_real and vice versa).
    real_t = jnp.clip(eud * lab, 1e-12, 1.0e12)
    fake_t = jnp.clip(eud * (1.0 - lab), 1e-12, 1.0e12)
    if needs_mask:
        real_t = jnp.where(valid, real_t, 0.0)   # mask AFTER clip (drop the floor)
        fake_t = jnp.where(valid, fake_t, 0.0)

    real_ref[...] += jnp.sum(real_t)
    fake_ref[...] += jnp.sum(fake_t)
    cnt_ref[...] += jnp.sum(lab)


def _vmem_capacity_bytes():
    try:
        cap = getattr(pltpu.get_tpu_info(), "vmem_capacity_bytes", None)
        if cap:
            return int(cap)
    except Exception:
        pass
    return 128 << 20                            # v5e / v6e physical VMEM


def _round_up(x, n):
    return (x + n - 1) // n * n


def _choose_tile_b(B, D, itemsize, block_budget):
    """Batch tile (sublane axis: multiple of 8, or full B), sized so one x block
    lands near the block budget, accounting for the lane-padded label block."""
    if B <= 8:
        return B
    bytes_per_row = D * itemsize + 512          # x row + lane-padded f32 label row
    rows = block_budget // max(bytes_per_row, 1)
    if rows >= B:
        return B                                # whole batch in a single block
    rows = max(8, (rows // 8) * 8)
    return min(int(rows), B)
    # TODO(synk): for extremely large D (a single 8-row strip over the budget),
    # also tile D and accumulate per-row partial squared sums across D chunks.


def single_center_loss(x, center, labels, *, m=0.3, tile_b=None):
    """x: (B, D) features (any float dtype), center: (D,), labels: (B,) ->
    scalar f32 loss.  Forward-pass equivalent of the PyTorch SingleCenterLoss."""
    B, D = x.shape
    margin = m * math.sqrt(float(D))
    itemsize = jnp.dtype(x.dtype).itemsize

    vmem_phys = _vmem_capacity_bytes()
    block_budget = min(8 << 20, vmem_phys // 12)   # ~8 MiB on 128 MiB parts, ~5 MiB on v7x
    if tile_b is None:
        tile_b = _choose_tile_b(B, D, itemsize, block_budget)

    n_blocks = -(-B // tile_b)
    npar = 2 if n_blocks >= 2 else 1               # split batch tiles across 2 TCs (v7x)
    bpp = -(-n_blocks // npar)                     # tiles per parallel slot
    clamp_blocks = (npar * bpp != n_blocks)        # uneven split -> duplicated, masked tiles
    needs_mask = (B % tile_b != 0) or clamp_blocks

    def data_map(p, j):                            # block index along the batch axis
        b = p * bpp + j
        if clamp_blocks:
            b = jnp.minimum(b, n_blocks - 1)       # keep DMA in-bounds; dup rows masked in-kernel
        return (b, 0)

    c2d = center.reshape(1, D)
    lab2d = labels.reshape(B, 1).astype(jnp.float32)

    kernel = functools.partial(_scl_kernel, batch_size=B, tile_b=tile_b,
                               blocks_per_par=bpp, needs_mask=needs_mask)

    part_shape = jax.ShapeDtypeStruct((npar, 1, 128), jnp.float32)
    part_spec = pl.BlockSpec((1, 1, 128), lambda p, j: (p, 0, 0))

    # Explicit, generation-aware scoped-VMEM limit so the larger double-buffered
    # blocks stay legal (v5e defaults to 16 MiB scoped VMEM).
    x_block = tile_b * D * itemsize
    lab_block = tile_b * 128 * 4                   # lane-padded (tile_b, 1) block
    c_block = 8 * _round_up(D, 128) * 4
    vmem_need = 2 * x_block + 2 * lab_block + 2 * c_block + 16 * 8 * 128 * 4 + (2 << 20)
    vmem_limit = int(min(max(vmem_need, 16 << 20), vmem_phys * 3 // 4))

    cost = pl.CostEstimate(
        flops=3 * B * D,
        transcendentals=B,                         # one sqrt per sample
        bytes_accessed=B * D * itemsize + B * 4 + D * 4 + npar * 3 * 128 * 4)

    real_p, fake_p, cnt_p = pl.pallas_call(
        kernel,
        out_shape=(part_shape, part_shape, part_shape),
        grid_spec=pltpu.PrefetchScalarGridSpec(
            num_scalar_prefetch=0,
            grid=(npar, bpp),
            in_specs=[
                pl.BlockSpec((tile_b, D), data_map),        # x tile, native (B, D) layout
                pl.BlockSpec((1, D), lambda p, j: (0, 0)),  # center, resident
                pl.BlockSpec((tile_b, 1), data_map),        # labels column
            ],
            out_specs=(part_spec, part_spec, part_spec),
        ),
        compiler_params=pltpu.CompilerParams(
            dimension_semantics=("parallel", "arbitrary"),
            vmem_limit_bytes=vmem_limit),
        cost_estimate=cost,
    )(x, c2d, lab2d)

    # Tiny wrapper-side combine of the per-core partials (divides + margin).
    real_sum = jnp.sum(real_p[:, 0, 0])
    fake_sum = jnp.sum(fake_p[:, 0, 0])
    cnt = jnp.sum(cnt_p[:, 0, 0])
    bsz = jnp.float32(B)
    dist_real = jnp.where(cnt != 0.0, real_sum / jnp.where(cnt != 0.0, cnt, 1.0), real_sum)
    dist_fake = jnp.where(cnt != bsz, fake_sum / jnp.where(cnt != bsz, bsz - cnt, 1.0), fake_sum)
    return dist_real + jnp.maximum(dist_real - dist_fake + jnp.float32(margin), 0.0)


def _reference(x, center, labels, *, m=0.3):
    # Pure-JAX reference mirroring the PyTorch forward, for sanity checking.
    B, D = x.shape
    margin = m * math.sqrt(float(D))
    xf = x.astype(jnp.float32)
    cf = center.astype(jnp.float32)
    lab = labels.reshape(B, 1).astype(jnp.float32)
    eud = jnp.sqrt(jnp.sum((xf - cf[None, :]) ** 2, axis=1, keepdims=True))
    real_count = jnp.sum(lab)
    dist_real = jnp.sum(jnp.clip(eud * lab, 1e-12, 1e12))
    dist_fake = jnp.sum(jnp.clip(eud * (1.0 - lab), 1e-12, 1e12))
    dist_real = jnp.where(real_count != 0, dist_real / real_count, dist_real)
    dist_fake = jnp.where(real_count != B,
                          dist_fake / (B - real_count), dist_fake)
    return dist_real + jnp.maximum(dist_real - dist_fake + margin, 0.0)


if __name__ == "__main__":
    key = jax.random.PRNGKey(0)

    def check(x, c, l, tol, **kw):
        out = jax.block_until_ready(single_center_loss(x, c, l, m=0.3, **kw))
        ref = jax.block_until_ready(_reference(x, c, l, m=0.3))
        assert jnp.allclose(out, ref, rtol=tol, atol=tol), (out, ref)

    # Case 1: small shapes consistent with the module (single-block path).
    B1, D1 = 8, 32
    k1, k2, k3, key = jax.random.split(key, 4)
    x1 = jax.random.normal(k1, (B1, D1), dtype=jnp.float32)
    c1 = jax.random.normal(k2, (D1,), dtype=jnp.float32)        # learnable center C
    l1 = jax.random.bernoulli(k3, 0.5, (B1,)).astype(jnp.int32)
    check(x1, c1, l1, 1e-4)

    # Case 2: multi-tile, 2-way parallel split, partial last tile masked.
    B2, D2 = 200, 64
    k1, k2, k3, key = jax.random.split(key, 4)
    x2 = jax.random.normal(k1, (B2, D2), dtype=jnp.float32)
    c2 = jax.random.normal(k2, (D2,), dtype=jnp.float32)
    l2 = jax.random.bernoulli(k3, 0.5, (B2,)).astype(jnp.int32)
    check(x2, c2, l2, 1e-4, tile_b=64)

    # Case 3: odd tile count -> uneven 2-core split (clamped duplicate tile fully masked).
    check(x2, c2, l2, 1e-4, tile_b=80)

    # Case 4: bf16 features stay bf16 through the DMA (upcast happens in-kernel).
    check(x1.astype(jnp.bfloat16), c1, l1, 2e-2)

    print("KERNEL_OK")
</pallas_src>

<mosaic_0001>
module attributes {stable_mosaic.version = 11 : i64} {
  func.func @_scl_kernel(%arg0: i32, %arg1: i32, %arg2: memref<8x32xf32, #tpu.memory_space<vmem>>, %arg3: memref<1x32xf32, #tpu.memory_space<vmem>>, %arg4: memref<8x1xf32, #tpu.memory_space<vmem>>, %arg5: memref<1x1x128xf32, #tpu.memory_space<vmem>>, %arg6: memref<1x1x128xf32, #tpu.memory_space<vmem>>, %arg7: memref<1x1x128xf32, #tpu.memory_space<vmem>>) attributes {dimension_semantics = [#tpu.dimension_semantics<parallel>, #tpu.dimension_semantics<arbitrary>], iteration_bounds = array<i64: 1, 1>, scalar_prefetch = 0 : i64, scratch_operands = 0 : i64, tpu.core_type = #tpu.core_type<tc>, window_params = [{transform_indices = @transform_0, window_bounds = array<i64: 8, 32>}, {pipeline_mode = #tpu.pipeline_mode<synchronous>, transform_indices = @transform_1, window_bounds = array<i64: 1, 32>}, {transform_indices = @transform_2, window_bounds = array<i64: 8, 1>}, {transform_indices = @transform_3, window_bounds = array<i64: 1, 1, 128>}, {transform_indices = @transform_4, window_bounds = array<i64: 1, 1, 128>}, {transform_indices = @transform_5, window_bounds = array<i64: 1, 1, 128>}]} {
    %c0_i32 = arith.constant 0 : i32
    %0 = arith.cmpi eq, %arg1, %c0_i32 : i32
    %1 = arith.extui %0 : i1 to i32
    %c0_i32_0 = arith.constant 0 : i32
    %2 = arith.cmpi ne, %1, %c0_i32_0 : i32
    scf.if %2 {
      %cst_32 = arith.constant 0.000000e+00 : f32
      %48 = vector.broadcast %cst_32 : f32 to vector<1x1x128xf32>
      %c0_33 = arith.constant 0 : index
      %c0_34 = arith.constant 0 : index
      %c0_35 = arith.constant 0 : index
      %49 = vector.load %arg5[%c0_33, %c0_34, %c0_35] : memref<1x1x128xf32, #tpu.memory_space<vmem>>, vector<1x1x128xf32>
      tpu.vector_store %arg5[%c0_33, %c0_34, %c0_35], %48 {strides = array<i32>} : memref<1x1x128xf32, #tpu.memory_space<vmem>>, vector<1x1x128xf32>,
      %cst_36 = arith.constant 0.000000e+00 : f32
      %50 = vector.broadcast %cst_36 : f32 to vector<1x1x128xf32>
      %c0_37 = arith.constant 0 : index
      %c0_38 = arith.constant 0 : index
      %c0_39 = arith.constant 0 : index
      %51 = vector.load %arg6[%c0_37, %c0_38, %c0_39] : memref<1x1x128xf32, #tpu.memory_space<vmem>>, vector<1x1x128xf32>
      tpu.vector_store %arg6[%c0_37, %c0_38, %c0_39], %50 {strides = array<i32>} : memref<1x1x128xf32, #tpu.memory_space<vmem>>, vector<1x1x128xf32>,
      %cst_40 = arith.constant 0.000000e+00 : f32
      %52 = vector.broadcast %cst_40 : f32 to vector<1x1x128xf32>
      %c0_41 = arith.constant 0 : index
      %c0_42 = arith.constant 0 : index
      %c0_43 = arith.constant 0 : index
      %53 = vector.load %arg7[%c0_41, %c0_42, %c0_43] : memref<1x1x128xf32, #tpu.memory_space<vmem>>, vector<1x1x128xf32>
      tpu.vector_store %arg7[%c0_41, %c0_42, %c0_43], %52 {strides = array<i32>} : memref<1x1x128xf32, #tpu.memory_space<vmem>>, vector<1x1x128xf32>,
    } else {
    }
    %c0 = arith.constant 0 : index
    %c0_1 = arith.constant 0 : index
    %3 = vector.load %arg2[%c0, %c0_1] : memref<8x32xf32, #tpu.memory_space<vmem>>, vector<8x32xf32>
    %c0_2 = arith.constant 0 : index
    %c0_3 = arith.constant 0 : index
    %4 = vector.load %arg3[%c0_2, %c0_3] : memref<1x32xf32, #tpu.memory_space<vmem>>, vector<1x32xf32>
    %c0_4 = arith.constant 0 : index
    %c0_5 = arith.constant 0 : index
    %5 = vector.load %arg4[%c0_4, %c0_5] : memref<8x1xf32, #tpu.memory_space<vmem>>, vector<8x1xf32>
    %6 = vector.broadcast %4 : vector<1x32xf32> to vector<8x32xf32>
    %7 = arith.subf %3, %6 : vector<8x32xf32>
    %8 = arith.mulf %7, %7 : vector<8x32xf32>
    %cst = arith.constant dense<0.000000e+00> : vector<8xf32>
    %9 = vector.multi_reduction <add>, %8, %cst [1] : vector<8x32xf32> to vector<8xf32>
    %10 = vector.shape_cast %9 : vector<8xf32> to vector<8x1xf32>
    %11 = math.sqrt %10 : vector<8x1xf32>
    %12 = arith.mulf %11, %5 : vector<8x1xf32>
    %cst_6 = arith.constant 9.99999996E-13 : f32
    %cst_7 = arith.constant 9.99999995E+11 : f32
    %13 = vector.broadcast %cst_6 : f32 to vector<8x1xf32>
    %14 = arith.maximumf %13, %12 : vector<8x1xf32>
    %15 = vector.broadcast %cst_7 : f32 to vector<8x1xf32>
    %16 = arith.minimumf %15, %14 : vector<8x1xf32>
    %cst_8 = arith.constant 1.000000e+00 : f32
    %17 = vector.broadcast %cst_8 : f32 to vector<8x1xf32>
    %18 = arith.subf %17, %5 : vector<8x1xf32>
    %19 = arith.mulf %11, %18 : vector<8x1xf32>
    %cst_9 = arith.constant 9.99999996E-13 : f32
    %cst_10 = arith.constant 9.99999995E+11 : f32
    %20 = vector.broadcast %cst_9 : f32 to vector<8x1xf32>
    %21 = arith.maximumf %20, %19 : vector<8x1xf32>
    %22 = vector.broadcast %cst_10 : f32 to vector<8x1xf32>
    %23 = arith.minimumf %22, %21 : vector<8x1xf32>
    %c0_11 = arith.constant 0 : index
    %c0_12 = arith.constant 0 : index
    %c0_13 = arith.constant 0 : index
    %24 = vector.load %arg5[%c0_11, %c0_12, %c0_13] : memref<1x1x128xf32, #tpu.memory_space<vmem>>, vector<1x1x128xf32>
    %25 = vector.shape_cast %16 : vector<8x1xf32> to vector<1x8x1xf32>
    %cst_14 = arith.constant dense<0.000000e+00> : vector<1xf32>
    %26 = vector.multi_reduction <add>, %25, %cst_14 [1, 2] : vector<1x8x1xf32> to vector<1xf32>
    %27 = vector.shape_cast %26 : vector<1xf32> to vector<1x1x1xf32>
    %28 = vector.extract %27[0, 0, 0] : f32 from vector<1x1x1xf32>
    %29 = vector.broadcast %28 : f32 to vector<1x1x128xf32>
    %30 = arith.addf %24, %29 : vector<1x1x128xf32>
    %c0_15 = arith.constant 0 : index
    %c0_16 = arith.constant 0 : index
    %c0_17 = arith.constant 0 : index
    %31 = vector.load %arg5[%c0_15, %c0_16, %c0_17] : memref<1x1x128xf32, #tpu.memory_space<vmem>>, vector<1x1x128xf32>
    tpu.vector_store %arg5[%c0_15, %c0_16, %c0_17], %30 {strides = array<i32>} : memref<1x1x128xf32, #tpu.memory_space<vmem>>, vector<1x1x128xf32>,
    %c0_18 = arith.constant 0 : index
    %c0_19 = arith.constant 0 : index
    %c0_20 = arith.constant 0 : index
    %32 = vector.load %arg6[%c0_18, %c0_19, %c0_20] : memref<1x1x128xf32, #tpu.memory_space<vmem>>, vector<1x1x128xf32>
    %33 = vector.shape_cast %23 : vector<8x1xf32> to vector<1x8x1xf32>
    %cst_21 = arith.constant dense<0.000000e+00> : vector<1xf32>
    %34 = vector.multi_reduction <add>, %33, %cst_21 [1, 2] : vector<1x8x1xf32> to vector<1xf32>
    %35 = vector.shape_cast %34 : vector<1xf32> to vector<1x1x1xf32>
    %36 = vector.extract %35[0, 0, 0] : f32 from vector<1x1x1xf32>
    %37 = vector.broadcast %36 : f32 to vector<1x1x128xf32>
    %38 = arith.addf %32, %37 : vector<1x1x128xf32>
    %c0_22 = arith.constant 0 : index
    %c0_23 = arith.constant 0 : index
    %c0_24 = arith.constant 0 : index
    %39 = vector.load %arg6[%c0_22, %c0_23, %c0_24] : memref<1x1x128xf32, #tpu.memory_space<vmem>>, vector<1x1x128xf32>
    tpu.vector_store %arg6[%c0_22, %c0_23, %c0_24], %38 {strides = array<i32>} : memref<1x1x128xf32, #tpu.memory_space<vmem>>, vector<1x1x128xf32>,
    %c0_25 = arith.constant 0 : index
    %c0_26 = arith.constant 0 : index
    %c0_27 = arith.constant 0 : index
    %40 = vector.load %arg7[%c0_25, %c0_26, %c0_27] : memref<1x1x128xf32, #tpu.memory_space<vmem>>, vector<1x1x128xf32>
    %41 = vector.shape_cast %5 : vector<8x1xf32> to vector<1x8x1xf32>
    %cst_28 = arith.constant dense<0.000000e+00> : vector<1xf32>
    %42 = vector.multi_reduction <add>, %41, %cst_28 [1, 2] : vector<1x8x1xf32> to vector<1xf32>
    %43 = vector.shape_cast %42 : vector<1xf32> to vector<1x1x1xf32>
    %44 = vector.extract %43[0, 0, 0] : f32 from vector<1x1x1xf32>
    %45 = vector.broadcast %44 : f32 to vector<1x1x128xf32>
    %46 = arith.addf %40, %45 : vector<1x1x128xf32>
    %c0_29 = arith.constant 0 : index
    %c0_30 = arith.constant 0 : index
    %c0_31 = arith.constant 0 : index
    %47 = vector.load %arg7[%c0_29, %c0_30, %c0_31] : memref<1x1x128xf32, #tpu.memory_space<vmem>>, vector<1x1x128xf32>
    tpu.vector_store %arg7[%c0_29, %c0_30, %c0_31], %46 {strides = array<i32>} : memref<1x1x128xf32, #tpu.memory_space<vmem>>, vector<1x1x128xf32>,
    return
  }
  func.func @transform_0(%arg0: i32, %arg1: i32) -> (i32, i32) {
    %c1_i32 = arith.constant 1 : i32
    %0 = arith.muli %arg0, %c1_i32 : i32
    %1 = arith.addi %0, %arg1 : i32
    %c0_i32 = arith.constant 0 : i32
    %c0_i32_0 = arith.constant 0 : i32
    return %1, %c0_i32 : i32, i32
  }
  func.func @transform_1(%arg0: i32, %arg1: i32) -> (i32, i32) {
    %c0_i32 = arith.constant 0 : i32
    %c0_i32_0 = arith.constant 0 : i32
    %c0_i32_1 = arith.constant 0 : i32
    return %c0_i32, %c0_i32_0 : i32, i32
  }
  func.func @transform_2(%arg0: i32, %arg1: i32) -> (i32, i32) {
    %c1_i32 = arith.constant 1 : i32
    %0 = arith.muli %arg0, %c1_i32 : i32
    %1 = arith.addi %0, %arg1 : i32
    %c0_i32 = arith.constant 0 : i32
    %c0_i32_0 = arith.constant 0 : i32
    return %1, %c0_i32 : i32, i32
  }
  func.func @transform_3(%arg0: i32, %arg1: i32) -> (i32, i32, i32) {
    %c0_i32 = arith.constant 0 : i32
    %c0_i32_0 = arith.constant 0 : i32
    %c0_i32_1 = arith.constant 0 : i32
    return %arg0, %c0_i32, %c0_i32_0 : i32, i32, i32
  }
  func.func @transform_4(%arg0: i32, %arg1: i32) -> (i32, i32, i32) {
    %c0_i32 = arith.constant 0 : i32
    %c0_i32_0 = arith.constant 0 : i32
    %c0_i32_1 = arith.constant 0 : i32
    return %arg0, %c0_i32, %c0_i32_0 : i32, i32, i32
  }
  func.func @transform_5(%arg0: i32, %arg1: i32) -> (i32, i32, i32) {
    %c0_i32 = arith.constant 0 : i32
    %c0_i32_0 = arith.constant 0 : i32
    %c0_i32_1 = arith.constant 0 : i32
    return %arg0, %c0_i32, %c0_i32_0 : i32, i32, i32
  }
}

</mosaic_0001>

<bundles_post_ra>
// kernel: tpu_custom_call.1
= control target key start
LH: loop header
LB: loop body
LE: loop exit
PB: predicated region body
PF: predicated region fallthrough
CT: control target
= control target key end

     0   :  { %11 = vsyncpa [#allocation3], 0  ;;  %s334_s0 = inlined_call_operand.vmem [shape: f32[8,32], index: 0, kind: input, shape index: {}]   ;;  %s335_s1 = inlined_call_operand.vmem [shape: f32[1,32], index: 1, kind: input, shape index: {}]   ;;  %s336_s2 = inlined_call_operand.vmem [shape: f32[8,1], index: 2, kind: input, shape index: {}]   ;;  %s337_s3 = inlined_call_operand.hbm [shape: f32[1,1,128], index: 3, kind: output, shape index: {0}]   ;;  %s338_s4 = inlined_call_operand.hbm [shape: f32[1,1,128], index: 4, kind: output, shape index: {1}]   ;;  %s339_s5 = inlined_call_operand.hbm [shape: f32[1,1,128], index: 5, kind: output, shape index: {2}]  }
   0x1   :  { %v60_v0 = vld [vmem:[%s334_s0] sm:$0xff] }
   0x2   :  { %v203_v1 = vld [vmem:[%s335_s1] ss:$0 sm:$0xff] }
   0x3   :  { %12 = vsyncpa [#allocation5], 0  ;;  %v66_v2 = vsub.f32 %v60_v0, %v203_v1  ;;  %vm68_vm0 = vcmask 261120   ;;  %v62_v11 = vld [vmem:[%s336_s2] sm:$0xff]  ;;  %vm92_vm3 = vcmask 7168   ;;  %v282_v27 = vmov 0.0  }
   0x4   :  { %v87_v14 = vsub.f32 1.0, %v62_v11  ;;  %v121_v26 = vsel %vm92_vm3, %v62_v11, 0.0  ;;  %57 = vst [vmem:[#allocation2] sm:$0x1] %v282_v27  ;;  %s283_s0 = smov [#allocation4]   ;;  %s284_s2 = smov [#allocation2]  }
   0x5   :  { %v67_v3 = vmul.f32 %v66_v2, %v66_v2  ;;  %58 = vst [vmem:[#allocation4] sm:$0x1] %v282_v27  ;;  %s150_s1 = sshll.u32 %s283_s0, 4  ;;  %s139_s24 = sshll.u32 %s284_s2, 4  ;;  %s140_s24 = int_to_ptr.vmem [resolvable:$true] %s139_s24  ;;  %s151_s1 = int_to_ptr.vmem [resolvable:$true] %s150_s1 }
   0x6   :  { %59 = vst [vmem:[#allocation6] sm:$0x1] %v282_v27  ;;  %s141_s27 = sshll.u32 %s337_s3, 4  ;;  %s152_s6 = sshll.u32 %s338_s4, 4  ;;  %s142_s27 = int_to_ptr.hbm [resolvable:$true] %s141_s27  ;;  %s153_s6 = int_to_ptr.hbm [resolvable:$true] %s152_s6 }
   0x7   :  { %v69_v4 = vsel %vm68_vm0, %v67_v3, 0.0  ;;  %s285_s3 = smov [#allocation6]   ;;  %s163_s4 = sshll.u32 %s339_s5, 4  ;;  %s164_s4 = int_to_ptr.hbm [resolvable:$true] %s163_s4 }
   0x8   :  { %70 = vadd.xlane.f32.xlu0 %v69_v4  ;;  %s161_s8 = sshll.u32 %s285_s3, 4  ;;  %s162_s8 = int_to_ptr.vmem [resolvable:$true] %s161_s8 }
   0xb   :  { %v91_v49 = vld [vmem:[#allocation2] sm:$0x1] }
   0xc   :  { %v106_v50 = vld [vmem:[#allocation4] sm:$0x1] }
   0xd   :  { %v120_v55 = vld [vmem:[#allocation6] sm:$0x1] }
  0x7b   :  { %v71_v5 = vpop.xlane.xlu0 %70 }
  0x7c   :  { %204 = vrsqrt.f32 %v71_v5  ;;  %vm79_vm1 = vcmp.eq.f32.partialorder %v71_v5, inf  ;;  %v82_v15 = vand.u32 2147483648, %v71_v5  ;;  %vm81_vm2 = vcmp.eq.f32.partialorder %v71_v5, 0.0 }
  0x82   :  { %v205_v6 = vpop.eup %204 }
  0x83   :  { %v73_v7 = vmul.f32 %v205_v6, %v71_v5 }
  0x85   :  { %v74_v8 = vmul.f32 %v205_v6, %v73_v7 }
  0x87   :  { %v75_v9 = vmul.f32 0.5, %v74_v8 }
  0x89   :  { %v76_v10 = vsub.f32 1.5, %v75_v9 }
  0x8b   :  { %v77_v12 = vmul.f32 %v205_v6, %v76_v10 }
  0x8d   :  { %v78_v13 = vmul.f32 %v77_v12, %v71_v5 }
  0x8f   :  { %v80_v16 = vsel %vm79_vm1, %v71_v5, %v78_v13 }
  0x90   :  { %v83_v17 = vsel %vm81_vm2, %v82_v15, %v80_v16 }
  0x91   :  { %v88_v18 = vmul.f32 %v87_v14, %v83_v17  ;;  %v84_v19 = vmul.f32 %v83_v17, %v62_v11 }
  0x93   :  { %v89_v20 = vmax.f32 %v88_v18, 1e-12  ;;  %v85_v21 = vmax.f32 %v84_v19, 1e-12 }
  0x95   :  { %v90_v22 = vmin.f32 %v89_v20, 1e+12  ;;  %v86_v23 = vmin.f32 %v85_v21, 1e+12 }
  0x97   :  { %v107_v24 = vsel %vm92_vm3, %v90_v22, 0.0  ;;  %v93_v25 = vsel %vm92_vm3, %v86_v23, 0.0 }
  0x98   :  { %108 = vadd.xlane.f32.xlu1 %v107_v24  ;;  %94 = vadd.xlane.f32.xlu0 %v93_v25 }
  0xa0   :  { %122 = vadd.xlane.f32.xlu1 %v121_v26 }
 0x10b   :  { %v109_v28 = vpop.xlane.xlu1 %108  ;;  %v95_v29 = vpop.xlane.xlu0 %94 }
 0x10c   :  { %v110_v30 = vrot.slane %v109_v28, 4  ;;  %v96_v31 = vrot.slane %v95_v29, 4 }
 0x10e   :  { %v111_v32 = vadd.f32 %v110_v30, %v109_v28  ;;  %v97_v33 = vadd.f32 %v96_v31, %v95_v29 }
 0x110   :  { %v112_v34 = vrot.slane %v111_v32, 2  ;;  %v98_v35 = vrot.slane %v97_v33, 2 }
 0x112   :  { %v99_v36 = vadd.f32 %v98_v35, %v97_v33  ;;  %v113_v37 = vadd.f32 %v112_v34, %v111_v32 }
 0x113   :  { %v123_v38 = vpop.xlane.xlu1 %122 }
 0x114   :  { %v124_v39 = vrot.slane %v123_v38, 4  ;;  %v100_v40 = vrot.slane %v99_v36, 1  ;;  %v114_v41 = vrot.slane %v113_v37, 1 }
 0x116   :  { %v125_v42 = vadd.f32 %v124_v39, %v123_v38  ;;  %v101_v43 = vadd.f32 %v100_v40, %v99_v36  ;;  %v115_v44 = vadd.f32 %v114_v41, %v113_v37 }
 0x118   :  { %v126_v45 = vrot.slane %v125_v42, 2  ;;  %193 = vpush %v101_v43 }
 0x119   :  { %195 = vpush %v115_v44 }
 0x11a   :  { %v127_v46 = vadd.f32 %v126_v45, %v125_v42 }
 0x11c   :  { %v128_v47 = vrot.slane %v127_v46, 1 }
 0x11e   :  { %v129_v48 = vadd.f32 %v128_v47, %v127_v46 }
 0x120   :  { %197 = vpush %v129_v48 }
 0x149   :  { %s194_s28 = spop %193 }
 0x14a   :  { %v103_v51 = vstv %s194_s28  ;;  %s196_s7 = spop %195 }
 0x14b   :  { %v104_v52 = vadd.f32 %v103_v51, %v91_v49  ;;  %v117_v53 = vstv %s196_s7 }
 0x14c   :  { %v118_v54 = vadd.f32 %v117_v53, %v106_v50 }
 0x14d   :  { %105 = vst [vmem:[#allocation2] sm:$0x1] %v104_v52 }
 0x14e   :  { %119 = vst [vmem:[#allocation4] sm:$0x1] %v118_v54  ;;  %144 = dma.vmem_to_hbm [thread:$0]  %s140_s24, 16, %s142_s27, [#allocation3]  }
 0x14f   :  { %155 = dma.vmem_to_hbm [thread:$0]  %s151_s1, 16, %s153_s6, [#allocation5]  }
 0x151   :  { %s198_s11 = spop %197 }
 0x152   :  { %v131_v56 = vstv %s198_s11 }
 0x153   :  { %v132_v57 = vadd.f32 %v131_v56, %v120_v55 }
 0x155   :  { %133 = vst [vmem:[#allocation6] sm:$0x1] %v132_v57 }
 0x156   :  { %166 = dma.vmem_to_hbm [thread:$0]  %s162_s8, 16, %s164_s4, [#allocation5]  }
 0x157   :  { %278 = dma.done.wait [#allocation3], 16  }
 0x158   :  { %279 = vsyncadd [#allocation3], 4294967280 }
 0x159   :  { %280 = dma.done.wait [#allocation5], 32  }
 0x15a   :  { %281 = vsyncadd [#allocation5], 4294967264 }
 0x15b   :  { %179 = vsyncpa [#allocation3], 1 }
 0x15c   :  { %180 = vsyncpa [#allocation5], 1 }

</bundles_post_ra>
